<compile_context>
chip_gen: v5e
topology: v5e:2x2
jax: 0.10.0
libtpu: 0.0.40
codegen_flags: <defaults>
</compile_context>

<pallas_src>
import functools

import jax
import jax.numpy as jnp
from jax.experimental import pallas as pl
from jax.experimental.pallas import tpu as pltpu

LANE = 128  # feature dims padded to this (lane-dense stores, full MXU lanes)


def _round_up(v, m):
    return (v + m - 1) // m * m


def _default_tile_n():
    """MXU-row-sized node tile: 128 on v5e and older, 256 on v6e/v7x."""
    try:
        kind = jax.devices()[0].device_kind.lower()
        if "v6" in kind or "v7" in kind:
            return 256
    except Exception:
        pass
    return 128


# ------------------------------ Pallas kernel ------------------------------

def gcn_fused_kernel(num_layers, num_tiles, tile_n, num_graphs,
                     x0_hbm, a_ref, w_ref, b_ref, maskt_ref,
                     pooled_ref,
                     h_buf, pooled_acc, x0_sem):
    """Grid = (layer, node_row_tile); h resident in a bf16 ping-pong VMEM scratch."""
    l = pl.program_id(0)
    i = pl.program_id(1)
    row = pl.multiple_of(i * tile_n, tile_n)

    cur = l % 2                        # ping-pong slot holding this layer's input
    is_last = l == num_layers - 1
    not_last = l < num_layers - 1

    # One-shot DMA of the padded bf16 input features from HBM into slot 0
    # (x0 is never carried as a pipelined, double-buffered VMEM input).
    @pl.when((l == 0) & (i == 0))
    def _():
        cp = pltpu.make_async_copy(x0_hbm, h_buf.at[0], x0_sem)
        cp.start()
        cp.wait()

    # Init the fused max-pool accumulator at the start of the last layer.
    @pl.when(is_last & (i == 0))
    def _():
        pooled_acc[...] = jnp.full_like(pooled_acc, -jnp.inf)

    # GCNConv for this node-row tile:
    #   agg = A_hat[tile, :] @ h_prev    (bf16 x bf16 -> f32 on the MXU)
    #   h   = agg @ W_l + b_l            (bf16 x bf16 -> f32 on the MXU)
    h_prev = h_buf[cur]                                      # (n_pad, d_pad) bf16
    agg = jnp.dot(a_ref[...], h_prev, preferred_element_type=jnp.float32)
    h = jnp.dot(agg.astype(jnp.bfloat16), w_ref[0],
                preferred_element_type=jnp.float32)
    h = h + b_ref[0]

    # Hidden layers: ReLU (eval-mode dropout = identity), publish this tile into
    # the other ping-pong slot in bf16 (the next matmul consumes bf16 anyway).
    h_next = jnp.maximum(h, 0.0).astype(jnp.bfloat16)

    @pl.when(not_last & (cur == 0))
    def _():
        h_buf[1, pl.ds(row, tile_n), :] = h_next

    @pl.when(not_last & (cur == 1))
    def _():
        h_buf[0, pl.ds(row, tile_n), :] = h_next

    # Last layer: fused incremental global max pooling over this tile.  h is
    # consumed straight from registers; it is never written back to VMEM/HBM.
    @pl.when(is_last)
    def _():
        mask = maskt_ref[...]                                # (tile_n, G)
        for g in range(num_graphs):                          # small & static
            col = mask[:, g:g + 1]                           # (tile_n, 1)
            mg = jnp.where(col > 0.5, h, -jnp.inf)
            tmax = jnp.max(mg, axis=0, keepdims=True)        # (1, d_pad)
            pooled_acc[g:g + 1, :] = jnp.maximum(pooled_acc[g:g + 1, :], tmax)

    # Single lane-dense output store at the very end of the grid.
    @pl.when(is_last & (i == num_tiles - 1))
    def _():
        pooled_ref[...] = pooled_acc[...]


# ------------------------------ JAX glue ------------------------------

def build_normalized_adjacency(src, dst, num_nodes, n_pad):
    """A_hat = D^{-1/2} (A + I) D^{-1/2} with A[dst, src] = 1 (PyG gcn_norm)."""
    loop = jnp.arange(num_nodes, dtype=src.dtype)
    s = jnp.concatenate([src, loop])
    d = jnp.concatenate([dst, loop])
    ones = jnp.ones((s.shape[0],), jnp.float32)
    deg = jnp.zeros((num_nodes,), jnp.float32).at[d].add(ones)
    dinv = jnp.where(deg > 0, jax.lax.rsqrt(deg), 0.0)
    w = dinv[s] * dinv[d]
    return jnp.zeros((n_pad, n_pad), jnp.float32).at[d, s].add(w)


def gcn_encoder_forward(params, x, src, dst, batch, num_graphs, *, tile_n=None):
    weights = params["weights"]      # list of (Cin_l, Cout_l)
    biases = params["biases"]        # list of (Cout_l,)
    num_layers = len(weights)
    n, feat = x.shape
    widths = [feat] + [w.shape[1] for w in weights]

    if tile_n is None:
        tile_n = _default_tile_n()

    d_pad = _round_up(max(widths), LANE)                 # keep K=d_pad at 128 if it fits
    n_pad = _round_up(n, max(tile_n, LANE))              # whole tiles AND lane-dense A cols
    num_tiles = n_pad // tile_n
    g_pad = max(8, _round_up(num_graphs, 8))

    # Zero padding keeps padded feature columns identically zero through every layer.
    x0 = (jnp.zeros((n_pad, d_pad), jnp.float32)
          .at[:n, :feat].set(x).astype(jnp.bfloat16))
    a_hat = build_normalized_adjacency(src, dst, n, n_pad).astype(jnp.bfloat16)

    w_stack = jnp.zeros((num_layers, d_pad, d_pad), jnp.float32)
    b_stack = jnp.zeros((num_layers, 1, d_pad), jnp.float32)
    for l, (w, b) in enumerate(zip(weights, biases)):
        cin, cout = w.shape
        w_stack = w_stack.at[l, :cin, :cout].set(w)
        b_stack = b_stack.at[l, 0, :cout].set(b)
    w_stack = w_stack.astype(jnp.bfloat16)

    # Transposed graph-membership matrix (n_pad, G); padded nodes belong to no graph.
    maskt = jnp.zeros((n_pad, num_graphs), jnp.float32).at[
        jnp.arange(n), batch].set(1.0)

    kernel = functools.partial(gcn_fused_kernel, num_layers, num_tiles, tile_n,
                               num_graphs)

    flops = num_layers * (2 * n_pad * n_pad * d_pad + 2 * n_pad * d_pad * d_pad)
    bytes_accessed = (num_layers * int(a_hat.size) * 2 + int(x0.size) * 2
                      + int(w_stack.size) * 2 + int(b_stack.size) * 4
                      + num_layers * int(maskt.size) * 4 + g_pad * d_pad * 4)

    vmem_need = (2 * n_pad * d_pad * 2           # resident bf16 h ping-pong
                 + 2 * tile_n * n_pad * 2        # A_hat row tile, double-buffered
                 + 2 * d_pad * d_pad * 2         # W_l, double-buffered
                 + 2 * d_pad * 4                 # b_l
                 + 2 * tile_n * num_graphs * 4   # mask tile
                 + 2 * g_pad * d_pad * 4)        # pooled accumulator + output block
    vmem_limit = int(min(max(2 * vmem_need, 8 << 20), 48 << 20))   # cap for v7x (64 MiB)

    pooled = pl.pallas_call(
        kernel,
        out_shape=jax.ShapeDtypeStruct((g_pad, d_pad), jnp.float32),
        grid_spec=pltpu.PrefetchScalarGridSpec(
            num_scalar_prefetch=0,
            grid=(num_layers, num_tiles),
            in_specs=[
                pl.BlockSpec(memory_space=pl.ANY),                        # x0 in HBM (one-shot DMA)
                pl.BlockSpec((tile_n, n_pad), lambda l, i: (i, 0)),       # A_hat row tile
                pl.BlockSpec((1, d_pad, d_pad), lambda l, i: (l, 0, 0)),  # W_l
                pl.BlockSpec((1, 1, d_pad), lambda l, i: (l, 0, 0)),      # b_l
                pl.BlockSpec((tile_n, num_graphs), lambda l, i: (i, 0)),  # membership^T tile
            ],
            out_specs=pl.BlockSpec((g_pad, d_pad), lambda l, i: (0, 0)),
            scratch_shapes=[
                pltpu.VMEM((2, n_pad, d_pad), jnp.bfloat16),   # h ping-pong (layer parity)
                pltpu.VMEM((g_pad, d_pad), jnp.float32),       # fused max-pool accumulator
                pltpu.SemaphoreType.DMA(()),                   # x0 one-shot DMA
            ],
        ),
        compiler_params=pltpu.CompilerParams(
            # Sequential dependence across layers/tiles (resident scratch, revisited
            # output) -> both axes "arbitrary".
            dimension_semantics=("arbitrary", "arbitrary"),
            vmem_limit_bytes=vmem_limit,
        ),
        cost_estimate=pl.CostEstimate(flops=flops, transcendentals=0,
                                      bytes_accessed=bytes_accessed),
    )(x0, a_hat, w_stack, b_stack, maskt)

    out = pooled[:num_graphs, :widths[-1]]
    return jnp.squeeze(out)                      # matches torch.squeeze


# ------------------------------ pure-JAX reference ------------------------------

def gcn_encoder_reference(params, x, src, dst, batch, num_graphs):
    n = x.shape[0]
    a_hat = build_normalized_adjacency(src, dst, n, n)
    h = x
    num_layers = len(params["weights"])
    for l in range(num_layers):
        h = a_hat @ (h @ params["weights"][l]) + params["biases"][l]
        if l < num_layers - 1:
            h = jnp.maximum(h, 0.0)
    pooled = jnp.full((num_graphs, h.shape[1]), -jnp.inf, jnp.float32).at[batch].max(h)
    return jnp.squeeze(pooled)


# ------------------------------ params / demo ------------------------------

def init_params(key, feature_dim, out_channels):
    weights, biases = [], []
    c_in = feature_dim
    for c_out in out_channels:
        key, kw, kb = jax.random.split(key, 3)
        scale = 1.0 / float(c_in) ** 0.5
        weights.append(scale * jax.random.normal(kw, (c_in, c_out), jnp.float32))
        biases.append(0.1 * jax.random.normal(kb, (c_out,), jnp.float32))
        c_in = c_out
    return {"weights": weights, "biases": biases}


if __name__ == "__main__":
    key = jax.random.PRNGKey(0)
    k_param, k_x = jax.random.split(key)

    FEATURE_DIM = 32
    OUT_CHANNELS = [64, 64, 48]   # 3 GCNConv layers
    NUM_GRAPHS = 2
    NODES_PER_GRAPH = 24          # 2 graphs x 24-node bidirected rings -> N=48, E=96

    params = init_params(k_param, FEATURE_DIM, OUT_CHANNELS)

    ring = jnp.arange(NODES_PER_GRAPH, dtype=jnp.int32)
    nxt = (ring + 1) % NODES_PER_GRAPH
    src0 = jnp.concatenate([ring, nxt])
    dst0 = jnp.concatenate([nxt, ring])
    src = jnp.concatenate([src0, src0 + NODES_PER_GRAPH]).astype(jnp.int32)
    dst = jnp.concatenate([dst0, dst0 + NODES_PER_GRAPH]).astype(jnp.int32)
    batch = jnp.repeat(jnp.arange(NUM_GRAPHS, dtype=jnp.int32), NODES_PER_GRAPH)

    num_nodes = NUM_GRAPHS * NODES_PER_GRAPH
    x = jax.random.normal(k_x, (num_nodes, FEATURE_DIM), jnp.float32)

    out = gcn_encoder_forward(params, x, src, dst, batch, NUM_GRAPHS)
    out = jax.block_until_ready(out)

    ref = gcn_encoder_reference(params, x, src, dst, batch, NUM_GRAPHS)

    assert out.shape == (NUM_GRAPHS, OUT_CHANNELS[-1]) and out.dtype == jnp.float32
    assert bool(jnp.all(jnp.isfinite(out)))
    # bf16 matmul operands with f32 accumulation -> loose tolerance vs f32 reference.
    assert bool(jnp.allclose(out, ref, rtol=8e-2, atol=8e-2)), \
        float(jnp.max(jnp.abs(out - ref)))

    print("KERNEL_OK")
</pallas_src>

<mosaic_0001>
module attributes {stable_mosaic.version = 11 : i64} {
  func.func @gcn_fused_kernel(%arg0: i32, %arg1: i32, %arg2: memref<128x128xbf16, #tpu.memory_space<any>>, %arg3: memref<128x128xbf16, #tpu.memory_space<vmem>>, %arg4: memref<1x128x128xbf16, #tpu.memory_space<vmem>>, %arg5: memref<1x1x128xf32, #tpu.memory_space<vmem>>, %arg6: memref<128x2xf32, #tpu.memory_space<vmem>>, %arg7: memref<8x128xf32, #tpu.memory_space<vmem>>, %arg8: memref<2x128x128xbf16, #tpu.memory_space<vmem>>, %arg9: memref<8x128xf32, #tpu.memory_space<vmem>>, %arg10: memref<!tpu.dma_semaphore, #tpu.memory_space<semaphore_mem>>) attributes {dimension_semantics = [#tpu.dimension_semantics<arbitrary>, #tpu.dimension_semantics<arbitrary>], iteration_bounds = array<i64: 3, 1>, scalar_prefetch = 0 : i64, scratch_operands = 3 : i64, tpu.core_type = #tpu.core_type<tc>, window_params = [{}, {transform_indices = @transform_1, window_bounds = array<i64: 128, 128>}, {transform_indices = @transform_2, window_bounds = array<i64: 1, 128, 128>}, {transform_indices = @transform_3, window_bounds = array<i64: 1, 1, 128>}, {transform_indices = @transform_4, window_bounds = array<i64: 128, 2>}, {pipeline_mode = #tpu.pipeline_mode<synchronous>, transform_indices = @transform_5, window_bounds = array<i64: 8, 128>}]} {
    %c128_i32 = arith.constant 128 : i32
    %0 = arith.muli %arg1, %c128_i32 : i32
    %1 = tpu.assume_multiple %0, 128 : i32
    %c2_i32 = arith.constant 2 : i32
    %c0_i32 = arith.constant 0 : i32
    %2 = arith.cmpi eq, %c2_i32, %c0_i32 : i32
    %c1_i32 = arith.constant 1 : i32
    %3 = arith.select %2, %c1_i32, %c2_i32 : i32
    %4 = arith.remsi %arg0, %3 : i32
    %c0_i32_0 = arith.constant 0 : i32
    %5 = arith.cmpi ne, %4, %c0_i32_0 : i32
    %c0_i32_1 = arith.constant 0 : i32
    %6 = arith.cmpi slt, %4, %c0_i32_1 : i32
    %c0_i32_2 = arith.constant 0 : i32
    %7 = arith.cmpi slt, %3, %c0_i32_2 : i32
    %8 = arith.xori %6, %7 : i1
    %9 = arith.andi %8, %5 : i1
    %10 = arith.addi %4, %3 : i32
    %11 = arith.select %9, %10, %4 : i32
    %c2_i32_3 = arith.constant 2 : i32
    %12 = arith.cmpi eq, %arg0, %c2_i32_3 : i32
    %c2_i32_4 = arith.constant 2 : i32
    %13 = arith.cmpi slt, %arg0, %c2_i32_4 : i32
    %c0_i32_5 = arith.constant 0 : i32
    %14 = arith.cmpi eq, %arg0, %c0_i32_5 : i32
    %c0_i32_6 = arith.constant 0 : i32
    %15 = arith.cmpi eq, %arg1, %c0_i32_6 : i32
    %16 = arith.andi %14, %15 : i1
    %17 = arith.extui %16 : i1 to i32
    %c0_i32_7 = arith.constant 0 : i32
    %18 = arith.cmpi ne, %17, %c0_i32_7 : i32
    scf.if %18 {
      %c0_i32_28 = arith.constant 0 : i32
      %c0_i32_29 = arith.constant 0 : i32
      %c0_i32_30 = arith.constant 0 : i32
      %53 = tpu.memref_slice %arg8[%c0_i32_28, %c0_i32_29, %c0_i32_30] : memref<2x128x128xbf16, #tpu.memory_space<vmem>> -> memref<1x128x128xbf16, #tpu.memory_space<vmem>>
      %54 = tpu.memref_squeeze %53 : memref<1x128x128xbf16, #tpu.memory_space<vmem>> -> memref<128x128xbf16, #tpu.memory_space<vmem>>
      tpu.enqueue_dma source(%arg2 : memref<128x128xbf16, #tpu.memory_space<any>>) target(%54 : memref<128x128xbf16, #tpu.memory_space<vmem>>) target_semaphore(%arg10 : memref<!tpu.dma_semaphore, #tpu.memory_space<semaphore_mem>>)
      %c0_i32_31 = arith.constant 0 : i32
      %c0_i32_32 = arith.constant 0 : i32
      %c0_i32_33 = arith.constant 0 : i32
      %55 = tpu.memref_slice %arg8[%c0_i32_31, %c0_i32_32, %c0_i32_33] : memref<2x128x128xbf16, #tpu.memory_space<vmem>> -> memref<1x128x128xbf16, #tpu.memory_space<vmem>>
      %56 = tpu.memref_squeeze %55 : memref<1x128x128xbf16, #tpu.memory_space<vmem>> -> memref<128x128xbf16, #tpu.memory_space<vmem>>
      tpu.wait_dma2 semaphore(%arg10 : memref<!tpu.dma_semaphore, #tpu.memory_space<semaphore_mem>>) src(%arg2 : memref<128x128xbf16, #tpu.memory_space<any>>) dst(%56 : memref<128x128xbf16, #tpu.memory_space<vmem>>)
    } else {
    }
    %c0_i32_8 = arith.constant 0 : i32
    %19 = arith.cmpi eq, %arg1, %c0_i32_8 : i32
    %20 = arith.andi %12, %19 : i1
    %21 = arith.extui %20 : i1 to i32
    %c0_i32_9 = arith.constant 0 : i32
    %22 = arith.cmpi ne, %21, %c0_i32_9 : i32
    scf.if %22 {
      %cst_28 = arith.constant 0xFF800000 : f32
      %53 = vector.broadcast %cst_28 : f32 to vector<8x128xf32>
      %c0_29 = arith.constant 0 : index
      %c0_30 = arith.constant 0 : index
      %54 = vector.load %arg9[%c0_29, %c0_30] : memref<8x128xf32, #tpu.memory_space<vmem>>, vector<8x128xf32>
      tpu.vector_store %arg9[%c0_29, %c0_30], %53 {strides = array<i32>} : memref<8x128xf32, #tpu.memory_space<vmem>>, vector<8x128xf32>,
    } else {
    }
    %23 = arith.index_cast %11 : i32 to index
    %c0 = arith.constant 0 : index
    %c0_10 = arith.constant 0 : index
    %24 = vector.load %arg8[%23, %c0, %c0_10] : memref<2x128x128xbf16, #tpu.memory_space<vmem>>, vector<1x128x128xbf16>
    %25 = vector.shape_cast %24 : vector<1x128x128xbf16> to vector<128x128xbf16>
    %c0_11 = arith.constant 0 : index
    %c0_12 = arith.constant 0 : index
    %26 = vector.load %arg3[%c0_11, %c0_12] : memref<128x128xbf16, #tpu.memory_space<vmem>>, vector<128x128xbf16>
    %cst = arith.constant dense<0.000000e+00> : vector<128x128xf32>
    %27 = tpu.matmul %26, %25, %cst {dimension_numbers = #tpu.dot_dimension_numbers<[1], [0], [0], [1], [0, 0, 1, 1], [], []>} : vector<128x128xbf16>, vector<128x128xbf16>, vector<128x128xf32> -> vector<128x128xf32>
    %28 = arith.truncf %27 : vector<128x128xf32> to vector<128x128xbf16>
    %c0_13 = arith.constant 0 : index
    %c0_14 = arith.constant 0 : index
    %c0_15 = arith.constant 0 : index
    %29 = vector.load %arg4[%c0_13, %c0_14, %c0_15] : memref<1x128x128xbf16, #tpu.memory_space<vmem>>, vector<1x128x128xbf16>
    %30 = vector.shape_cast %29 : vector<1x128x128xbf16> to vector<128x128xbf16>
    %cst_16 = arith.constant dense<0.000000e+00> : vector<128x128xf32>
    %31 = tpu.matmul %28, %30, %cst_16 {dimension_numbers = #tpu.dot_dimension_numbers<[1], [0], [0], [1], [0, 0, 1, 1], [], []>} : vector<128x128xbf16>, vector<128x128xbf16>, vector<128x128xf32> -> vector<128x128xf32>
    %c0_17 = arith.constant 0 : index
    %c0_18 = arith.constant 0 : index
    %c0_19 = arith.constant 0 : index
    %32 = vector.load %arg5[%c0_17, %c0_18, %c0_19] : memref<1x1x128xf32, #tpu.memory_space<vmem>>, vector<1x1x128xf32>
    %33 = vector.shape_cast %32 : vector<1x1x128xf32> to vector<1x128xf32>
    %34 = vector.broadcast %33 : vector<1x128xf32> to vector<128x128xf32>
    %35 = arith.addf %31, %34 : vector<128x128xf32>
    %cst_20 = arith.constant 0.000000e+00 : f32
    %36 = vector.broadcast %cst_20 : f32 to vector<128x128xf32>
    %37 = arith.maximumf %35, %36 : vector<128x128xf32>
    %38 = arith.truncf %37 : vector<128x128xf32> to vector<128x128xbf16>
    %c0_i32_21 = arith.constant 0 : i32
    %39 = arith.cmpi eq, %11, %c0_i32_21 : i32
    %40 = arith.andi %13, %39 : i1
    %41 = arith.extui %40 : i1 to i32
    %c0_i32_22 = arith.constant 0 : i32
    %42 = arith.cmpi ne, %41, %c0_i32_22 : i32
    scf.if %42 {
      %c1 = arith.constant 1 : index
      %53 = arith.index_cast %1 : i32 to index
      %c0_28 = arith.constant 0 : index
      %54 = vector.load %arg8[%c1, %53, %c0_28] : memref<2x128x128xbf16, #tpu.memory_space<vmem>>, vector<1x128x128xbf16>
      %55 = vector.shape_cast %54 : vector<1x128x128xbf16> to vector<128x128xbf16>
      %56 = vector.shape_cast %38 : vector<128x128xbf16> to vector<1x128x128xbf16>
      tpu.vector_store %arg8[%c1, %53, %c0_28], %56 {strides = array<i32>} : memref<2x128x128xbf16, #tpu.memory_space<vmem>>, vector<1x128x128xbf16>,
    } else {
    }
    %c1_i32_23 = arith.constant 1 : i32
    %43 = arith.cmpi eq, %11, %c1_i32_23 : i32
    %44 = arith.andi %13, %43 : i1
    %45 = arith.extui %44 : i1 to i32
    %c0_i32_24 = arith.constant 0 : i32
    %46 = arith.cmpi ne, %45, %c0_i32_24 : i32
    scf.if %46 {
      %c0_28 = arith.constant 0 : index
      %53 = arith.index_cast %1 : i32 to index
      %c0_29 = arith.constant 0 : index
      %54 = vector.load %arg8[%c0_28, %53, %c0_29] : memref<2x128x128xbf16, #tpu.memory_space<vmem>>, vector<1x128x128xbf16>
      %55 = vector.shape_cast %54 : vector<1x128x128xbf16> to vector<128x128xbf16>
      %56 = vector.shape_cast %38 : vector<128x128xbf16> to vector<1x128x128xbf16>
      tpu.vector_store %arg8[%c0_28, %53, %c0_29], %56 {strides = array<i32>} : memref<2x128x128xbf16, #tpu.memory_space<vmem>>, vector<1x128x128xbf16>,
    } else {
    }
    %47 = arith.extui %12 : i1 to i32
    %c0_i32_25 = arith.constant 0 : i32
    %48 = arith.cmpi ne, %47, %c0_i32_25 : i32
    scf.if %48 {
      %c0_28 = arith.constant 0 : index
      %c0_29 = arith.constant 0 : index
      %53 = vector.load %arg6[%c0_28, %c0_29] : memref<128x2xf32, #tpu.memory_space<vmem>>, vector<128x2xf32>
      %54 = vector.extract_strided_slice %53 {offsets = [0, 0], sizes = [128, 1], strides = [1, 1]} : vector<128x2xf32> to vector<128x1xf32>
      %cst_30 = arith.constant 5.000000e-01 : f32
      %55 = vector.broadcast %cst_30 : f32 to vector<128x1xf32>
      %56 = arith.cmpf ogt, %54, %55 : vector<128x1xf32>
      %cst_31 = arith.constant 0xFF800000 : f32
      %57 = vector.shape_cast %56 : vector<128x1xi1> to vector<128x1xi1>
      %58 = vector.broadcast %57 : vector<128x1xi1> to vector<128x128xi1>
      %59 = vector.broadcast %cst_31 : f32 to vector<128x128xf32>
      %60 = arith.select %58, %35, %59 : vector<128x128xi1>, vector<128x128xf32>
      %cst_32 = arith.constant dense<0xFF800000> : vector<128xf32>
      %61 = vector.multi_reduction <maximumf>, %60, %cst_32 [0] : vector<128x128xf32> to vector<128xf32>
      %62 = vector.shape_cast %61 : vector<128xf32> to vector<1x128xf32>
      %c0_33 = arith.constant 0 : index
      %c0_34 = arith.constant 0 : index
      %63 = vector.load %arg9[%c0_33, %c0_34] : memref<8x128xf32, #tpu.memory_space<vmem>>, vector<1x128xf32>
      %64 = arith.maximumf %63, %62 : vector<1x128xf32>
      %c0_35 = arith.constant 0 : index
      %c0_36 = arith.constant 0 : index
      %65 = vector.load %arg9[%c0_35, %c0_36] : memref<8x128xf32, #tpu.memory_space<vmem>>, vector<1x128xf32>
      tpu.vector_store %arg9[%c0_35, %c0_36], %64 {strides = array<i32>} : memref<8x128xf32, #tpu.memory_space<vmem>>, vector<1x128xf32>,
      %66 = vector.extract_strided_slice %53 {offsets = [0, 1], sizes = [128, 1], strides = [1, 1]} : vector<128x2xf32> to vector<128x1xf32>
      %cst_37 = arith.constant 5.000000e-01 : f32
      %67 = vector.broadcast %cst_37 : f32 to vector<128x1xf32>
      %68 = arith.cmpf ogt, %66, %67 : vector<128x1xf32>
      %cst_38 = arith.constant 0xFF800000 : f32
      %69 = vector.shape_cast %68 : vector<128x1xi1> to vector<128x1xi1>
      %70 = vector.broadcast %69 : vector<128x1xi1> to vector<128x128xi1>
      %71 = vector.broadcast %cst_38 : f32 to vector<128x128xf32>
      %72 = arith.select %70, %35, %71 : vector<128x128xi1>, vector<128x128xf32>
      %cst_39 = arith.constant dense<0xFF800000> : vector<128xf32>
      %73 = vector.multi_reduction <maximumf>, %72, %cst_39 [0] : vector<128x128xf32> to vector<128xf32>
      %74 = vector.shape_cast %73 : vector<128xf32> to vector<1x128xf32>
      %c1 = arith.constant 1 : index
      %c0_40 = arith.constant 0 : index
      %75 = vector.load %arg9[%c1, %c0_40] : memref<8x128xf32, #tpu.memory_space<vmem>>, vector<1x128xf32>
      %76 = arith.maximumf %75, %74 : vector<1x128xf32>
      %c1_41 = arith.constant 1 : index
      %c0_42 = arith.constant 0 : index
      %77 = vector.load %arg9[%c1_41, %c0_42] : memref<8x128xf32, #tpu.memory_space<vmem>>, vector<1x128xf32>
      tpu.vector_store %arg9[%c1_41, %c0_42], %76 {strides = array<i32>} : memref<8x128xf32, #tpu.memory_space<vmem>>, vector<1x128xf32>,
    } else {
    }
    %c0_i32_26 = arith.constant 0 : i32
    %49 = arith.cmpi eq, %arg1, %c0_i32_26 : i32
    %50 = arith.andi %12, %49 : i1
    %51 = arith.extui %50 : i1 to i32
    %c0_i32_27 = arith.constant 0 : i32
    %52 = arith.cmpi ne, %51, %c0_i32_27 : i32
    scf.if %52 {
      %c0_28 = arith.constant 0 : index
      %c0_29 = arith.constant 0 : index
      %53 = vector.load %arg9[%c0_28, %c0_29] : memref<8x128xf32, #tpu.memory_space<vmem>>, vector<8x128xf32>
      %c0_30 = arith.constant 0 : index
      %c0_31 = arith.constant 0 : index
      %54 = vector.load %arg7[%c0_30, %c0_31] : memref<8x128xf32, #tpu.memory_space<vmem>>, vector<8x128xf32>
      tpu.vector_store %arg7[%c0_30, %c0_31], %53 {strides = array<i32>} : memref<8x128xf32, #tpu.memory_space<vmem>>, vector<8x128xf32>,
    } else {
    }
    return
  }
  func.func @transform_1(%arg0: i32, %arg1: i32) -> (i32, i32) {
    %c0_i32 = arith.constant 0 : i32
    %c0_i32_0 = arith.constant 0 : i32
    return %arg1, %c0_i32 : i32, i32
  }
  func.func @transform_2(%arg0: i32, %arg1: i32) -> (i32, i32, i32) {
    %c0_i32 = arith.constant 0 : i32
    %c0_i32_0 = arith.constant 0 : i32
    %c0_i32_1 = arith.constant 0 : i32
    return %arg0, %c0_i32, %c0_i32_0 : i32, i32, i32
  }
  func.func @transform_3(%arg0: i32, %arg1: i32) -> (i32, i32, i32) {
    %c0_i32 = arith.constant 0 : i32
    %c0_i32_0 = arith.constant 0 : i32
    %c0_i32_1 = arith.constant 0 : i32
    return %arg0, %c0_i32, %c0_i32_0 : i32, i32, i32
  }
  func.func @transform_4(%arg0: i32, %arg1: i32) -> (i32, i32) {
    %c0_i32 = arith.constant 0 : i32
    %c0_i32_0 = arith.constant 0 : i32
    return %arg1, %c0_i32 : i32, i32
  }
  func.func @transform_5(%arg0: i32, %arg1: i32) -> (i32, i32) {
    %c0_i32 = arith.constant 0 : i32
    %c0_i32_0 = arith.constant 0 : i32
    %c0_i32_1 = arith.constant 0 : i32
    return %c0_i32, %c0_i32_0 : i32, i32
  }
}

</mosaic_0001>

<bundles_post_ra>
// kernel: tpu_custom_call.1
= control target key start
LH: loop header
LB: loop body
LE: loop exit
PB: predicated region body
PF: predicated region fallthrough
CT: control target
= control target key end

     0   :  { %10 = vsyncpa [#allocation6], 0  ;;  %s1972_s0 = inlined_call_operand.vmem [shape: bf16[128,128], index: 0, kind: input, shape index: {}]   ;;  %s1973_s1 = inlined_call_operand.vmem [shape: bf16[128,128], index: 1, kind: input, shape index: {}]   ;;  %s1974_s2 = inlined_call_operand.hbm [shape: bf16[3,128,128], index: 2, kind: input, shape index: {}]   ;;  %s1975_s3 = inlined_call_operand.vmem [shape: f32[3,1,128], index: 3, kind: input, shape index: {}]   ;;  %s1976_s4 = inlined_call_operand.vmem [shape: f32[128,2], index: 4, kind: input, shape index: {}]   ;;  %s1977_s5 = inlined_call_operand.hbm [shape: f32[8,128], index: 5, kind: output, shape index: {}]  }
   0x1   :  { %12 = vsyncpa [#allocation6 + $0x1], 0 }
   0x2   :  { %13 = vsyncpa [#allocation7], 0  ;;  %s1614_s18 = smov 0   ;;  %s1616_s19 = smov 0  }
   0x3   :  { %s1618_s20 = smov 0   ;;  %s1620_s21 = smov 0  }
   0x4   :  { %s1622_s22 = smov 0   ;;  %s1624_s23 = smov 0  }
   0x5 LB: > { %s1114_s24 = sadd.s32 4294967295, %s1576_s23   ;;  %s31_s25 = sadd.s32 1, %s1572_s22  ;;  %s1576_s23 = sphi %s1624_s23, %s19_s23   ;;  %s1572_s22 = sphi %s1622_s22, %s1985_s22   ;;  %s1568_s21 = sphi %s1620_s21, %s1984_s21   ;;  %s1564_s20 = sphi %s1618_s20, %s1983_s20   ;;  %s1560_s19 = sphi %s1616_s19, %s1982_s19   ;;  %s1556_s18 = sphi %s1614_s18, %s1981_s18  }
   0x6   : > { %p33_p0 = scmp.ge.s32.totalorder %s31_s25, 3  ;;  %s64_s26 = sadd.s32 1, %s1564_s20 }
   0x7   : > { %p71_p1 = scmp.ne.s32.totalorder %s1564_s20, %s1560_s19  ;;  %p72_p2 = scmp.eq.s32.totalorder %s1576_s23, 0 }
   0x8   : > { %s1987_s25 = smov (%p33_p0, %s31_s25), 0  ;;  %p77_p4 = scmp.ne.s32.totalorder %s1560_s19, %s1556_s18 }
   0x9   : > { %p1650_p3 = por %p72_p2, %p71_p1  ;;  %s61_s28 = ssub.s32 %s1572_s22, %s1987_s25 }
   0xa   : > { %p78_p5 = scmp.eq.s32.totalorder %s1114_s24, 0  ;;  %p62_p6 = scmp.eq.s32.totalorder %s61_s28, 0 }
   0xb   : > { %p1398_p8 = scmp.lt.s32.totalorder %s1576_s23, 3  ;;  %s192_s6 = sand.u32 1, %s1564_s20  }
   0xc   : > { %p1659_p7 = por %p78_p5, %p77_p4  ;;  %s1249_s7 = sshll.u32 %s1572_s22, 6 }
   0xd   : > { %s1665_s30 = scalar_select %p62_p6, %s1564_s20, %s64_s26  }
   0xe   : > { %s1119_s8 = sshll.u32 %s192_s6, 6  ;;  %s201_s11 = scalar_lea.hbm %s1974_s2, %s1249_s7 }
   0xf   : > { %s202_s12 = sshll.u32 %s201_s11, 4  ;;  %s196_s13 = scalar_lea.vmem [#allocation5], %s1119_s8  ;;  %s203_s12 = int_to_ptr.hbm [resolvable:$true] %s202_s12 }
  0x10   : > { %s204_s14 = sshll.u32 %s196_s13, 4  ;;  %p1395_p9 = pnand %p1398_p8, %p1650_p3  ;;  %s205_s14 = int_to_ptr.vmem [resolvable:$true] %s204_s14 }
  0x11   : > { %p1122_p10 = scmp.ge.s32.totalorder %s1576_s23, 1  ;;  %p218_p11 = scmp.lt.s32.totalorder %s1576_s23, 4 }
  0x12   : > { %s193_s15 = scalar_lea.sflag [#allocation6], %s192_s6  ;;  %s1578_s16 = smov 64  }
  0x13   : > { %s1579_s17 = smov 4   ;;  %p219_p12 = pnand %p1122_p10, %p218_p11 }
  0x14   : > { %1397 = dma.hbm_to_vmem [thread:$0]  (!%p1395_p9), %s203_s12, 1024, %s205_s14, %s193_s15, %s1578_s16, %s1578_s16, %s1579_s17  }
  0x15   : > { %222 = sbr.rel (%p219_p12) target bundleno = 688 (0x2b0), region = 36  ;;  %s224_s18 = sand.u32 (!%p219_p12), 1, %s1560_s19  }
  0x16   : > { %s1123_s26 = sshll.u32 (!%p219_p12), %s224_s18, 6  ;;  %s225_s28 = scalar_lea.sflag (!%p219_p12), [#allocation6], %s224_s18 }
  0x17   : > { %s1677_s7 = scalar_lea.vmem (!%p219_p12), [#allocation5], %s1123_s26 }
  0x1a   : > { %1545 = dma.done.wait (%p1659_p7), %s225_s28, 1024  }
  0x1b   : > { %1547 = vsyncadd (%p1659_p7), %s225_s28, 4294966272  ;;  %p268_p13 = scmp.lt.s32.totalorder %s1568_s21, 2  ;;  %p278_p0 = scmp.lt.s32.totalorder %s1568_s21, 0 }
  0x1c   : > { %s279_s27 = ssub.s32 0, %s1568_s21  ;;  %p290_p1 = scmp.eq.s32.totalorder %s1568_s21, 2 }
  0x1d   : > { %s1690_s6 = scalar_select %p268_p13, %s1568_s21, 2 }
  0x1e   : > { %s1124_s8 = smin.u32 %s1568_s21, %s279_s27  ;;  %p292_p2 = scmp.eq.s32.totalorder %s1568_s21, 0 }
  0x1f   : > { %s270_s10 = scalar_lea.vmem %s1975_s3, %s1690_s6  ;;  %s281_s11 = sand.u32 1, %s1124_s8   ;;  %v308_v0 = vld [vmem:[%s1972_s0] sm:$0xff] (%p292_p2)  ;;  %v310_v1 = vld [vmem:[%s1972_s0 + $0x8] sm:$0xff] (%p292_p2)  ;;  %v312_v2 = vld [vmem:[%s1972_s0 + $0x10] sm:$0xff] (%p292_p2) }
  0x20   : > { %s282_s12 = ssub.s32 0, %s281_s11  ;;  %297 = sbr.rel (!%p292_p2) target bundleno = 43 (0x2b), region = 44  ;;  %309 = vst [vmem:[#allocation2] sm:$0xff] (%p292_p2), %v308_v0  ;;  %v314_v3 = vld [vmem:[%s1972_s0 + $0x18] sm:$0xff] (%p292_p2)  ;;  %v316_v4 = vld [vmem:[%s1972_s0 + $0x20] sm:$0xff] (%p292_p2)  ;;  %v318_v5 = vld [vmem:[%s1972_s0 + $0x28] sm:$0xff] (%p292_p2) }
  0x21   : > { %s1989_s12 = smov (!%p278_p0, %s282_s12), %s281_s11  ;;  %311 = vst [vmem:[#allocation2 + $0x8] sm:$0xff] (%p292_p2), %v310_v1  ;;  %v320_v6 = vld [vmem:[%s1972_s0 + $0x30] sm:$0xff] (%p292_p2)  ;;  %v322_v7 = vld [vmem:[%s1972_s0 + $0x38] sm:$0xff] (%p292_p2) }
  0x22   : > { %p1126_p3 = scmp.lt.s32.totalorder %s1989_s12, 0  ;;  %s288_s13 = sadd.s32 2, %s1989_s12  ;;  %313 = vst [vmem:[#allocation2 + $0x10] sm:$0xff] (%p292_p2), %v312_v2 }
  0x23   : > { %315 = vst [vmem:[#allocation2 + $0x18] sm:$0xff] (%p292_p2), %v314_v3 }
  0x24   : > { %s1991_s13 = smov (!%p1126_p3, %s288_s13), %s1989_s12  ;;  %317 = vst [vmem:[#allocation2 + $0x20] sm:$0xff] (%p292_p2), %v316_v4 }
  0x25   : > { %319 = vst [vmem:[#allocation2 + $0x28] sm:$0xff] %v318_v5 }
  0x26   : > { %321 = vst [vmem:[#allocation2 + $0x30] sm:$0xff] %v320_v6 }
  0x27   : > { %323 = vst [vmem:[#allocation2 + $0x38] sm:$0xff] %v322_v7 }
  0x28   : > { %329 = vsyncadd [#allocation4], 1024 }
  0x29   : > { %1548 = dma.done.wait [#allocation4], 1024 }
  0x2a   : > { %1549 = vsyncadd [#allocation4], 4294966272 }
  0x2b PF: > { %337 = sbr.rel (!%p290_p1) target bundleno = 48 (0x30), region = 67  ;;  %v1580_v8 = vmov (%p290_p1), -inf  }
  0x2c   : > { %338 = vst [vmem:[#allocation3] sm:$0xff] (%p290_p1), %v1580_v8 }
  0x30 PF: > { %s1252_s17 = sshll.u32 %s1991_s13, 6  ;;  %v1261_v17 = vld [vmem:[%s1973_s1] sm:$0xff]  ;;  %v1262_v19 = vld [vmem:[%s1973_s1 + $0x8] sm:$0xff]  ;;  %v1275_v22 = vld [vmem:[%s1677_s7 + $0x30] sm:$0xff]  ;;  %p676_p4 = scmp.eq.s32.totalorder %s1991_s13, 0 }
  0x31   : > { %s341_s18 = scalar_lea.vmem [#allocation2], %s1252_s17  ;;  %v1265_v18 = vld [vmem:[%s1973_s1 + $0x20] sm:$0xff]  ;;  %v1266_v20 = vld [vmem:[%s1973_s1 + $0x28] sm:$0xff]  ;;  %v1274_v23 = vld [vmem:[%s1677_s7 + $0x28] sm:$0xff] }
  0x32   : > { %v1260_v9 = vld [vmem:[%s341_s18 + $0x38] sm:$0xff]  ;;  %v1259_v10 = vld [vmem:[%s341_s18 + $0x30] sm:$0xff]  ;;  %v1258_v11 = vld [vmem:[%s341_s18 + $0x28] sm:$0xff]  ;;  %p1762_p5 = pnand %p676_p4, %p268_p13 }
  0x33   : > { %470 = vmatpush.bf16.msra.mxu0 %v1260_v9  ;;  %1372 = vmatpush.bf16.msra.mxu2 %v1260_v9  ;;  %v1257_v12 = vld [vmem:[%s341_s18 + $0x20] sm:$0xff]  ;;  %v1256_v13 = vld [vmem:[%s341_s18 + $0x18] sm:$0xff]  ;;  %v1255_v14 = vld [vmem:[%s341_s18 + $0x10] sm:$0xff] }
  0x34   : > { %v1254_v15 = vld [vmem:[%s341_s18 + $0x8] sm:$0xff]  ;;  %v1253_v16 = vld [vmem:[%s341_s18] sm:$0xff]  ;;  %v1263_v25 = vld [vmem:[%s1973_s1 + $0x10] sm:$0xff] }
  0x35   : > { %v1276_v21 = vld [vmem:[%s1677_s7 + $0x38] sm:$0xff]  ;;  %v1273_v24 = vld [vmem:[%s1677_s7 + $0x20] sm:$0xff]  ;;  %v1267_v26 = vld [vmem:[%s1973_s1 + $0x30] sm:$0xff] }
  0x36   : > { %595 = vmatpush.bf16.msra.mxu1 %v1276_v21  ;;  %1380 = vmatpush.bf16.msra.mxu3 %v1276_v21  ;;  %v1272_v27 = vld [vmem:[%s1677_s7 + $0x18] sm:$0xff]  ;;  %v1264_v28 = vld [vmem:[%s1973_s1 + $0x18] sm:$0xff]  ;;  %v1270_v31 = vld [vmem:[%s1677_s7 + $0x8] sm:$0xff] }
  0x37   : > { %471 = vmatpush.bf16.msra.mxu0 %v1259_v10  ;;  %1373 = vmatpush.bf16.msra.mxu2 %v1259_v10  ;;  %v1268_v29 = vld [vmem:[%s1973_s1 + $0x38] sm:$0xff]  ;;  %v1269_v32 = vld [vmem:[%s1677_s7] sm:$0xff]  ;;  %v1455_v57 = vld [vmem:[%s270_s10] ss:$0 sm:$0xff] }
  0x38   : > { %v1271_v30 = vld [vmem:[%s1677_s7 + $0x10] sm:$0xff] }
  0x3a   : > { %596 = vmatpush.bf16.msra.mxu1 %v1275_v22  ;;  %1381 = vmatpush.bf16.msra.mxu3 %v1275_v22 }
  0x3b   : > { %472 = vmatpush.bf16.msra.mxu0 %v1258_v11  ;;  %1374 = vmatpush.bf16.msra.mxu2 %v1258_v11 }
  0x3e   : > { %597 = vmatpush.bf16.msra.mxu1 %v1274_v23  ;;  %1382 = vmatpush.bf16.msra.mxu3 %v1274_v23 }
  0x3f   : > { %473 = vmatpush.bf16.msra.mxu0 %v1257_v12  ;;  %1375 = vmatpush.bf16.msra.mxu2 %v1257_v12 }
  0x42   : > { %598 = vmatpush.bf16.msra.mxu1 %v1273_v24  ;;  %1383 = vmatpush.bf16.msra.mxu3 %v1273_v24 }
  0x43   : > { %474 = vmatpush.bf16.msra.mxu0 %v1256_v13  ;;  %1376 = vmatpush.bf16.msra.mxu2 %v1256_v13 }
  0x46   : > { %599 = vmatpush.bf16.msra.mxu1 %v1272_v27  ;;  %1384 = vmatpush.bf16.msra.mxu3 %v1272_v27 }
  0x47   : > { %475 = vmatpush.bf16.msra.mxu0 %v1255_v14  ;;  %1377 = vmatpush.bf16.msra.mxu2 %v1255_v14 }
  0x4a   : > { %600 = vmatpush.bf16.msra.mxu1 %v1271_v30  ;;  %1385 = vmatpush.bf16.msra.mxu3 %v1271_v30 }
  0x4b   : > { %476 = vmatpush.bf16.msra.mxu0 %v1254_v15  ;;  %1378 = vmatpush.bf16.msra.mxu2 %v1254_v15 }
  0x4e   : > { %601 = vmatpush.bf16.msra.mxu1 %v1270_v31  ;;  %1386 = vmatpush.bf16.msra.mxu3 %v1270_v31 }
  0x4f   : > { %477 = vmatpush.bf16.msra.mxu0 %v1253_v16  ;;  %1379 = vmatpush.bf16.msra.mxu2 %v1253_v16 }
  0x52   : > { %478 = vmatmul.bf16.vlgmr.msra.gmra.mxu0 %v1261_v17  ;;  %498 = vmatmul.bf16.vlgmr.msra.gmra.mxu2 %v1265_v18 }
  0x53   : > { %602 = vmatpush.bf16.msra.mxu1 %v1269_v32  ;;  %1387 = vmatpush.bf16.msra.mxu3 %v1269_v32 }
  0x62   : > { %483 = vmatmul.bf16.gmra.mxu0 %v1262_v19  ;;  %503 = vmatmul.bf16.gmra.mxu2 %v1266_v20 }
  0x72   : > { %488 = vmatmul.bf16.gmra.mxu0 %v1263_v25  ;;  %508 = vmatmul.bf16.gmra.mxu2 %v1267_v26 }
  0x82   : > { %493 = vmatmul.bf16.gmra.mxu0 %v1264_v28  ;;  %513 = vmatmul.bf16.gmra.mxu2 %v1268_v29 }
  0xcf   : > { %v479_v33 = vpop.f32.mrf.mxu0 }
  0xd5   : > { %v499_v34 = vpop.f32.mrf.mxu2 }
  0xd7   : > { %v481_v35 = vpop.f32.mrf.mxu0 }
  0xd8   : > { %v519_v36 = vpack.c.bf16 %v481_v35, %v479_v33 }
  0xda   : > { %603 = vmatmul.bf16.vlgmr.msra.gmra.mxu1 %v519_v36 }
  0xdd   : > { %v501_v37 = vpop.f32.mrf.mxu2 }
  0xde   : > { %v523_v38 = vpack.c.bf16 %v501_v37, %v499_v34 }
  0xdf   : > { %v484_v39 = vpop.f32.mrf.mxu0 }
  0xe0   : > { %623 = vmatmul.bf16.vlgmr.msra.gmra.mxu3 %v523_v38 }
  0xe5   : > { %v504_v40 = vpop.f32.mrf.mxu2 }
  0xe7   : > { %v486_v41 = vpop.f32.mrf.mxu0 }
  0xe8   : > { %v520_v42 = vpack.c.bf16 %v486_v41, %v484_v39 }
  0xea   : > { %608 = vmatmul.bf16.gmra.mxu1 %v520_v42 }
  0xed   : > { %v506_v43 = vpop.f32.mrf.mxu2 }
  0xee   : > { %v524_v44 = vpack.c.bf16 %v506_v43, %v504_v40 }
  0xef   : > { %v489_v45 = vpop.f32.mrf.mxu0 }
  0xf0   : > { %628 = vmatmul.bf16.gmra.mxu3 %v524_v44 }
  0xf5   : > { %v509_v46 = vpop.f32.mrf.mxu2 }
  0xf7   : > { %v491_v47 = vpop.f32.mrf.mxu0 }
  0xf8   : > { %v521_v48 = vpack.c.bf16 %v491_v47, %v489_v45 }
  0xfa   : > { %613 = vmatmul.bf16.gmra.mxu1 %v521_v48 }
  0xfd   : > { %v511_v49 = vpop.f32.mrf.mxu2 }
  0xfe   : > { %v525_v50 = vpack.c.bf16 %v511_v49, %v509_v46 }
  0xff   : > { %v494_v51 = vpop.f32.mrf.mxu0 }
 0x100   : > { %633 = vmatmul.bf16.gmra.mxu3 %v525_v50 }
 0x105   : > { %v514_v52 = vpop.f32.mrf.mxu2 }
 0x107   : > { %v496_v53 = vpop.f32.mrf.mxu0 }
 0x108   : > { %v522_v54 = vpack.c.bf16 %v496_v53, %v494_v51 }
 0x10a   : > { %618 = vmatmul.bf16.gmra.mxu1 %v522_v54 }
 0x10d   : > { %v516_v55 = vpop.f32.mrf.mxu2 }
 0x10e   : > { %v526_v56 = vpack.c.bf16 %v516_v55, %v514_v52 }
 0x110   : > { %638 = vmatmul.bf16.gmra.mxu3 %v526_v56 }
 0x157   : > { %v604_v58 = vpop.f32.mrf.mxu1 }
 0x158   : > { %v1771_v59 = vadd.f32 %v1455_v57, %v604_v58 }
 0x15a   : > { %v644_v60 = vmax.f32 %v1771_v59, 0.0 }
 0x15f   : > { %v606_v61 = vpop.f32.mrf.mxu1 }
 0x160   : > { %v1774_v62 = vadd.f32 %v1455_v57, %v606_v61 }
 0x162   : > { %v645_v63 = vmax.f32 %v1774_v62, 0.0 }
 0x163   : > { %v624_v0 = vpop.f32.mrf.mxu3 }
 0x164   : > { %v1777_v1 = vadd.f32 %v1455_v57, %v624_v0 }
 0x166   : > { %v652_v2 = vmax.f32 %v1777_v1, 0.0 }
 0x167   : > { %v609_v3 = vpop.f32.mrf.mxu1 }
 0x168   : > { %v1780_v4 = vadd.f32 %v1455_v57, %v609_v3 }
 0x16a   : > { %v646_v5 = vmax.f32 %v1780_v4, 0.0 }
 0x16b   : > { %v626_v6 = vpop.f32.mrf.mxu3 }
 0x16c   : > { %v1783_v7 = vadd.f32 %v1455_v57, %v626_v6 }
 0x16e   : > { %v653_v8 = vmax.f32 %v1783_v7, 0.0 }
 0x16f   : > { %v611_v9 = vpop.f32.mrf.mxu1 }
 0x170   : > { %v1786_v10 = vadd.f32 %v1455_v57, %v611_v9 }
 0x172   : > { %v647_v11 = vmax.f32 %v1786_v10, 0.0 }
 0x173   : > { %v629_v12 = vpop.f32.mrf.mxu3 }
 0x174   : > { %v1789_v13 = vadd.f32 %v1455_v57, %v629_v12 }
 0x176   : > { %v654_v14 = vmax.f32 %v1789_v13, 0.0 }
 0x177   : > { %v614_v15 = vpop.f32.mrf.mxu1 }
 0x178   : > { %v1792_v16 = vadd.f32 %v1455_v57, %v614_v15 }
 0x17a   : > { %v648_v17 = vmax.f32 %v1792_v16, 0.0 }
 0x17b   : > { %v631_v18 = vpop.f32.mrf.mxu3 }
 0x17c   : > { %v1795_v19 = vadd.f32 %v1455_v57, %v631_v18 }
 0x17e   : > { %v655_v20 = vmax.f32 %v1795_v19, 0.0 }
 0x17f   : > { %v616_v21 = vpop.f32.mrf.mxu1 }
 0x180   : > { %v1798_v22 = vadd.f32 %v1455_v57, %v616_v21 }
 0x182   : > { %v649_v23 = vmax.f32 %v1798_v22, 0.0 }
 0x183   : > { %v634_v24 = vpop.f32.mrf.mxu3 }
 0x184   : > { %v1801_v25 = vadd.f32 %v1455_v57, %v634_v24 }
 0x186   : > { %v656_v26 = vmax.f32 %v1801_v25, 0.0 }
 0x187   : > { %v619_v27 = vpop.f32.mrf.mxu1 }
 0x188   : > { %v1804_v28 = vadd.f32 %v1455_v57, %v619_v27 }
 0x18a   : > { %v650_v29 = vmax.f32 %v1804_v28, 0.0 }
 0x18b   : > { %v636_v30 = vpop.f32.mrf.mxu3 }
 0x18c   : > { %v1807_v31 = vadd.f32 %v1455_v57, %v636_v30 }
 0x18e   : > { %v657_v32 = vmax.f32 %v1807_v31, 0.0 }
 0x18f   : > { %v621_v33 = vpop.f32.mrf.mxu1 }
 0x190   : > { %v1810_v34 = vadd.f32 %v1455_v57, %v621_v33 }
 0x192   : > { %v651_v35 = vmax.f32 %v1810_v34, 0.0 }
 0x193   : > { %v639_v36 = vpop.f32.mrf.mxu3 }
 0x194   : > { %v1813_v37 = vadd.f32 %v1455_v57, %v639_v36 }
 0x196   : > { %v658_v38 = vmax.f32 %v1813_v37, 0.0 }
 0x19a   : > { %680 = sbr.rel (%p1762_p5) target bundleno = 425 (0x1a9), region = 71 }
 0x19b   : > { %v641_v39 = vpop.f32.mrf.mxu3 }
 0x19c   : > { %v1816_v40 = vadd.f32 %v1455_v57, %v641_v39 }
 0x19e   : > { %v659_v41 = vmax.f32 %v1816_v40, 0.0 }
 0x19f   : > { %v1280_v42 = vpack.c.bf16 %v645_v63, %v644_v60  ;;  %v1285_v43 = vpack.c.bf16 %v647_v11, %v646_v5  ;;  %v1290_v44 = vpack.c.bf16 %v649_v23, %v648_v17  ;;  %v1295_v45 = vpack.c.bf16 %v651_v35, %v650_v29 }
 0x1a0   : > { %v1300_v46 = vpack.c.bf16 %v653_v8, %v652_v2  ;;  %v1305_v47 = vpack.c.bf16 %v655_v20, %v654_v14  ;;  %v1310_v48 = vpack.c.bf16 %v657_v32, %v656_v26  ;;  %v1315_v49 = vpack.c.bf16 %v659_v41, %v658_v38 }
 0x1a1   : > { %1357 = vst [vmem:[#allocation2 + $0x40] sm:$0xff] %v1280_v42  }
 0x1a2   : > { %1358 = vst [vmem:[#allocation2 + $0x48] sm:$0xff] %v1285_v43  }
 0x1a3   : > { %1359 = vst [vmem:[#allocation2 + $0x50] sm:$0xff] %v1290_v44  }
 0x1a4   : > { %1360 = vst [vmem:[#allocation2 + $0x58] sm:$0xff] %v1295_v45  }
 0x1a5   : > { %1361 = vst [vmem:[#allocation2 + $0x60] sm:$0xff] %v1300_v46  }
 0x1a6   : > { %1362 = vst [vmem:[#allocation2 + $0x68] sm:$0xff] %v1305_v47  }
 0x1a7   : > { %1363 = vst [vmem:[#allocation2 + $0x70] sm:$0xff] %v1310_v48  }
 0x1a8   : > { %1364 = vst [vmem:[#allocation2 + $0x78] sm:$0xff] %v1315_v49  }
 0x1a9 PF: > { %p702_p6 = scmp.eq.s32.totalorder %s1991_s13, 1 }
 0x1ab   : > { %p703_p7 = pnand %p702_p6, %p268_p13 }
 0x1ad   : > { %706 = sbr.rel (%p703_p7) target bundleno = 444 (0x1bc), region = 75 }
 0x1b2   : > { %v1320_v50 = vpack.c.bf16 %v645_v63, %v644_v60  ;;  %v1325_v51 = vpack.c.bf16 %v647_v11, %v646_v5  ;;  %v1330_v52 = vpack.c.bf16 %v649_v23, %v648_v17  ;;  %v1335_v53 = vpack.c.bf16 %v651_v35, %v650_v29 }
 0x1b3   : > { %v1340_v54 = vpack.c.bf16 %v653_v8, %v652_v2  ;;  %v1345_v55 = vpack.c.bf16 %v655_v20, %v654_v14  ;;  %v1350_v56 = vpack.c.bf16 %v657_v32, %v656_v26  ;;  %v1355_v57 = vpack.c.bf16 %v659_v41, %v658_v38 }
 0x1b4   : > { %1321 = vst [vmem:[#allocation2] sm:$0xff] %v1320_v50  }
 0x1b5   : > { %1365 = vst [vmem:[#allocation2 + $0x8] sm:$0xff] %v1325_v51  }
 0x1b6   : > { %1366 = vst [vmem:[#allocation2 + $0x10] sm:$0xff] %v1330_v52  }
 0x1b7   : > { %1367 = vst [vmem:[#allocation2 + $0x18] sm:$0xff] %v1335_v53  }
 0x1b8   : > { %1368 = vst [vmem:[#allocation2 + $0x20] sm:$0xff] %v1340_v54  }
 0x1b9   : > { %1369 = vst [vmem:[#allocation2 + $0x28] sm:$0xff] %v1345_v55  }
 0x1ba   : > { %1370 = vst [vmem:[#allocation2 + $0x30] sm:$0xff] %v1350_v56  }
 0x1bb   : > { %1371 = vst [vmem:[#allocation2 + $0x38] sm:$0xff] %v1355_v57  }
 0x1bc PF: > { %p1243_p8 = scmp.ne.s32.totalorder %s1568_s21, 2 }
 0x1be   : > { %729 = sbr.rel (%p1243_p8) target bundleno = 674 (0x2a2), region = 79 }
 0x1c3   : > { %v734_v58 = vld [vmem:[%s1976_s4 + $0x20] sm:$0xff]  ;;  %v732_v60 = vld [vmem:[%s1976_s4 + $0x10] sm:$0xff]  ;;  %v1581_v63 = vmov 0   ;;  %v735_v5 = vld [vmem:[%s1976_s4 + $0x28] sm:$0xff]  ;;  %v1582_v43 = vmov 1  }
 0x1c4   : > { %v730_v61 = vld [vmem:[%s1976_s4] sm:$0xff]  ;;  %1458 = vset.pattern.permute.xlu2 %v1581_v63  ;;  %1457 = vset.pattern.permute.xlu1 %v1581_v63  ;;  %vm750_vm0 = vcmp.gt.f32.partialorder %v734_v58, 0.5  ;;  %vm748_vm1 = vcmp.gt.f32.partialorder %v732_v60, 0.5  ;;  %v733_v6 = vld [vmem:[%s1976_s4 + $0x18] sm:$0xff]  ;;  %v731_v8 = vld [vmem:[%s1976_s4 + $0x8] sm:$0xff]  ;;  %vm751_vm3 = vcmp.gt.f32.partialorder %v735_v5, 0.5 }
 0x1c5   : > { %vm746_vm2 = vcmp.gt.f32.partialorder %v730_v61, 0.5  ;;  %1456 = vset.pattern.permute.xlu0 %v1581_v63  ;;  %v1850_v0 = vsel %vm750_vm0, 1, %v1581_v63  ;;  %v1853_v2 = vsel %vm748_vm1, 1, %v1581_v63  ;;  %vm749_vm4 = vcmp.gt.f32.partialorder %v733_v6, 0.5  ;;  %v738_v14 = vld [vmem:[%s1976_s4 + $0x40] sm:$0xff]  ;;  %v737_v15 = vld [vmem:[%s1976_s4 + $0x38] sm:$0xff] }
 0x1c6   : > { %v762_v3 = vsel %vm746_vm2, 1, %v1581_v63  ;;  %791 = vperm.xlu2 %1458, %v1850_v0   ;;  %785 = vperm.xlu1 %1457, %v1853_v2   ;;  %vm747_vm5 = vcmp.gt.f32.partialorder %v731_v8, 0.5  ;;  %v767_v9 = vsel %vm751_vm3, 1, %v1581_v63  ;;  %v765_v11 = vsel %vm749_vm4, 1, %v1581_v63  ;;  %v736_v17 = vld [vmem:[%s1976_s4 + $0x30] sm:$0xff]  ;;  %v741_v23 = vld [vmem:[%s1976_s4 + $0x58] sm:$0xff] }
 0x1c7   : > { %779 = vperm.xlu0 %1456, %v762_v3   ;;  %v763_v12 = vsel %vm747_vm5, 1, %v1581_v63  ;;  %vm754_vm6 = vcmp.gt.f32.partialorder %v738_v14, 0.5  ;;  %vm753_vm7 = vcmp.gt.f32.partialorder %v737_v15, 0.5  ;;  %vm752_vm8 = vcmp.gt.f32.partialorder %v736_v17, 0.5  ;;  %v740_v24 = vld [vmem:[%s1976_s4 + $0x50] sm:$0xff]  ;;  %v739_v26 = vld [vmem:[%s1976_s4 + $0x48] sm:$0xff] }
 0x1c8   : > { %v770_v18 = vsel %vm754_vm6, 1, %v1581_v63  ;;  %v769_v20 = vsel %vm753_vm7, 1, %v1581_v63  ;;  %v768_v21 = vsel %vm752_vm8, 1, %v1581_v63  ;;  %vm757_vm9 = vcmp.gt.f32.partialorder %v741_v23, 0.5  ;;  %v744_v32 = vld [vmem:[%s1976_s4 + $0x70] sm:$0xff]  ;;  %v743_v33 = vld [vmem:[%s1976_s4 + $0x68] sm:$0xff] }
 0x1c9   : > { %vm756_vm10 = vcmp.gt.f32.partialorder %v740_v24, 0.5  ;;  %vm755_vm11 = vcmp.gt.f32.partialorder %v739_v26, 0.5  ;;  %v773_v27 = vsel %vm757_vm9, 1, %v1581_v63  ;;  %v742_v35 = vld [vmem:[%s1976_s4 + $0x60] sm:$0xff]  ;;  %vm760_vm12 = vcmp.gt.f32.partialorder %v744_v32, 0.5  ;;  %v745_v41 = vld [vmem:[%s1976_s4 + $0x78] sm:$0xff] }
 0x1ca   : > { %v772_v29 = vsel %vm756_vm10, 1, %v1581_v63  ;;  %v771_v30 = vsel %vm755_vm11, 1, %v1581_v63  ;;  %vm759_vm13 = vcmp.gt.f32.partialorder %v743_v33, 0.5  ;;  %vm758_vm14 = vcmp.gt.f32.partialorder %v742_v35, 0.5 }
 0x1cb   : > { %v776_v36 = vsel %vm760_vm12, 1, %v1581_v63  ;;  %v775_v38 = vsel %vm759_vm13, 1, %v1581_v63  ;;  %v774_v39 = vsel %vm758_vm14, 1, %v1581_v63  ;;  %vm761_vm15 = vcmp.gt.f32.partialorder %v745_v41, 0.5 }
 0x1cc   : > { %v777_v42 = vsel %vm761_vm15, 1, %v1581_v63 }
 0x1ce   : > { %794 = vperm.xlu2 %1458, %v767_v9   ;;  %788 = vperm.xlu1 %1457, %v765_v11  }
 0x1cf   : > { %782 = vperm.xlu0 %1456, %v763_v12  }
 0x1d6   : > { %803 = vperm.xlu2 %1458, %v770_v18   ;;  %800 = vperm.xlu1 %1457, %v769_v20  }
 0x1d7   : > { %797 = vperm.xlu0 %1456, %v768_v21  }
 0x1de   : > { %812 = vperm.xlu2 %1458, %v773_v27   ;;  %809 = vperm.xlu1 %1457, %v772_v29  }
 0x1df   : > { %806 = vperm.xlu0 %1456, %v771_v30  }
 0x1e6   : > { %821 = vperm.xlu2 %1458, %v776_v36   ;;  %818 = vperm.xlu1 %1457, %v775_v38  }
 0x1e7   : > { %815 = vperm.xlu0 %1456, %v774_v39  }
 0x1ee   : > { %1460 = vset.pattern.permute.xlu2 %v1582_v43  ;;  %1459 = vset.pattern.permute.xlu1 %v1582_v43 }
 0x1ef   : > { %824 = vperm.xlu0 %1456, %v777_v42   ;;  %886 = vperm.xlu2 %1460, %v763_v12  }
 0x1f0   : > { %883 = vperm.xlu1 %1459, %v762_v3  }
 0x1f7   : > { %1461 = vset.pattern.permute.xlu0 %v1582_v43  ;;  %895 = vperm.xlu2 %1460, %v1850_v0  }
 0x1f8   : > { %892 = vperm.xlu1 %1459, %v765_v11   ;;  %889 = vperm.xlu0 %1461, %v1853_v2  }
 0x1ff   : > { %901 = vperm.xlu2 %1460, %v768_v21  }
 0x200   : > { %898 = vperm.xlu1 %1459, %v767_v9   ;;  %904 = vperm.xlu0 %1461, %v769_v20  }
 0x207   : > { %910 = vperm.xlu2 %1460, %v771_v30  }
 0x208   : > { %907 = vperm.xlu1 %1459, %v770_v18   ;;  %913 = vperm.xlu0 %1461, %v772_v29  }
 0x20f   : > { %919 = vperm.xlu2 %1460, %v774_v39  }
 0x210   : > { %916 = vperm.xlu1 %1459, %v773_v27   ;;  %922 = vperm.xlu0 %1461, %v775_v38  }
 0x217   : > { %928 = vperm.xlu2 %1460, %v777_v42  }
 0x218   : > { %925 = vperm.xlu1 %1459, %v776_v36  }
 0x220   : > { %v792_v44 = vpop.permute.xlu2 %791 }
 0x221   : > { %vm830_vm0 = vcmp.eq.s32.totalorder %v792_v44, 1 }
 0x222   : > { %v846_v60 = vsel %vm830_vm0, %v1792_v16, -inf }
 0x228   : > { %v795_v45 = vpop.permute.xlu2 %794 }
 0x229   : > { %vm831_vm2 = vcmp.eq.s32.totalorder %v795_v45, 1 }
 0x22a   : > { %v847_v0 = vsel %vm831_vm2, %v1798_v22, -inf }
 0x230   : > { %v804_v46 = vpop.permute.xlu2 %803 }
 0x231   : > { %vm834_vm10 = vcmp.eq.s32.totalorder %v804_v46, 1 }
 0x232   : > { %v850_v20 = vsel %vm834_vm10, %v1777_v1, -inf }
 0x238   : > { %v786_v47 = vpop.permute.xlu1 %785  ;;  %v813_v49 = vpop.permute.xlu2 %812 }
 0x239   : > { %v780_v48 = vpop.permute.xlu0 %779  ;;  %vm828_vm6 = vcmp.eq.s32.totalorder %v786_v47, 1  ;;  %vm837_vm13 = vcmp.eq.s32.totalorder %v813_v49, 1 }
 0x23a   : > { %vm826_vm1 = vcmp.eq.s32.totalorder %v780_v48, 1  ;;  %v844_v8 = vsel %vm828_vm6, %v1780_v4, -inf  ;;  %v853_v29 = vsel %vm837_vm13, %v1795_v19, -inf }
 0x23b   : > { %v842_v61 = vsel %vm826_vm1, %v1771_v59, -inf }
 0x23c   : > { %v858_v6 = vmax.f32 %v842_v61, %v846_v60 }
 0x23e   : > { %v862_v27 = vmax.f32 %v858_v6, %v850_v20 }
 0x240   : > { %v789_v50 = vpop.permute.xlu1 %788  ;;  %v822_v53 = vpop.permute.xlu2 %821 }
 0x241   : > { %v783_v51 = vpop.permute.xlu0 %782  ;;  %vm829_vm7 = vcmp.eq.s32.totalorder %v789_v50, 1  ;;  %vm840_vm14 = vcmp.eq.s32.totalorder %v822_v53, 1 }
 0x242   : > { %vm827_vm3 = vcmp.eq.s32.totalorder %v783_v51, 1  ;;  %v845_v9 = vsel %vm829_vm7, %v1786_v10, -inf  ;;  %v856_v38 = vsel %vm840_vm14, %v1813_v37, -inf }
 0x243   : > { %v843_v2 = vsel %vm827_vm3, %v1774_v62, -inf }
 0x244   : > { %v859_v15 = vmax.f32 %v843_v2, %v847_v0 }
 0x248   : > { %v801_v52 = vpop.permute.xlu1 %800 }
 0x249   : > { %v798_v54 = vpop.permute.xlu0 %797  ;;  %v1912_v57 = vpop.permute.xlu2 %886  ;;  %vm833_vm4 = vcmp.eq.s32.totalorder %v801_v52, 1 }
 0x24a   : > { %vm832_vm5 = vcmp.eq.s32.totalorder %v798_v54, 1  ;;  %v849_v3 = vsel %vm833_vm4, %v1810_v34, -inf  ;;  %vm931_vm0 = vcmp.eq.s32.totalorder %v1912_v57, 1 }
 0x24b   : > { %v848_v5 = vsel %vm832_vm5, %v1804_v28, -inf  ;;  %v861_v17 = vmax.f32 %v845_v9, %v849_v3  ;;  %v947_v3 = vsel %vm931_vm0, %v1774_v62, -inf }
 0x24c   : > { %v860_v18 = vmax.f32 %v844_v8, %v848_v5 }
 0x24d   : > { %v865_v35 = vmax.f32 %v861_v17, %v853_v29 }
 0x250   : > { %v810_v55 = vpop.permute.xlu1 %809 }
 0x251   : > { %v807_v56 = vpop.permute.xlu0 %806  ;;  %vm836_vm8 = vcmp.eq.s32.totalorder %v810_v55, 1  ;;  %v896_v14 = vpop.permute.xlu2 %895 }
 0x252   : > { %vm835_vm9 = vcmp.eq.s32.totalorder %v807_v56, 1  ;;  %v852_v11 = vsel %vm836_vm8, %v1789_v13, -inf  ;;  %vm934_vm2 = vcmp.eq.s32.totalorder %v896_v14, 1 }
 0x253   : > { %v851_v12 = vsel %vm835_vm9, %v1783_v7, -inf  ;;  %v864_v24 = vmax.f32 %v860_v18, %v852_v11  ;;  %v950_v9 = vsel %vm934_vm2, %v1792_v16, -inf }
 0x254   : > { %v863_v26 = vmax.f32 %v859_v15, %v851_v12 }
 0x255   : > { %v868_v41 = vmax.f32 %v864_v24, %v856_v38 }
 0x258   : > { %v819_v58 = vpop.permute.xlu1 %818 }
 0x259   : > { %v816_v63 = vpop.permute.xlu0 %815  ;;  %vm839_vm11 = vcmp.eq.s32.totalorder %v819_v58, 1  ;;  %v902_v45 = vpop.permute.xlu2 %901  ;;  %v879_v58 = vld [vmem:[#allocation3] sm:$0x1] }
 0x25a   : > { %vm838_vm12 = vcmp.eq.s32.totalorder %v816_v63, 1  ;;  %v855_v21 = vsel %vm839_vm11, %v1807_v31, -inf  ;;  %vm936_vm9 = vcmp.eq.s32.totalorder %v902_v45, 1 }
 0x25b   : > { %v854_v23 = vsel %vm838_vm12, %v1801_v25, -inf  ;;  %v867_v32 = vmax.f32 %v863_v26, %v855_v21  ;;  %v952_v17 = vsel %vm936_vm9, %v1804_v28, -inf }
 0x25c   : > { %v866_v33 = vmax.f32 %v862_v27, %v854_v23 }
 0x25e   : > { %v870_v43 = vmax.f32 %v866_v33, %v867_v32 }
 0x261   : > { %v825_v30 = vpop.permute.xlu0 %824  ;;  %v911_v53 = vpop.permute.xlu2 %910 }
 0x262   : > { %vm841_vm15 = vcmp.eq.s32.totalorder %v825_v30, 1  ;;  %v884_v36 = vpop.permute.xlu1 %883  ;;  %vm939_vm10 = vcmp.eq.s32.totalorder %v911_v53, 1 }
 0x263   : > { %v857_v39 = vsel %vm841_vm15, %v1816_v40, -inf  ;;  %vm930_vm3 = vcmp.eq.s32.totalorder %v884_v36, 1  ;;  %v955_v18 = vsel %vm939_vm10, %v1783_v7, -inf }
 0x264   : > { %v869_v42 = vmax.f32 %v865_v35, %v857_v39  ;;  %v946_v57 = vsel %vm930_vm3, %v1771_v59, -inf }
 0x265   : > { %v962_v20 = vmax.f32 %v946_v57, %v950_v9 }
 0x266   : > { %v871_v44 = vmax.f32 %v868_v41, %v869_v42  ;;  %v983_v42 = vld [vmem:[#allocation3 + $0x1] sm:$0x1] }
 0x268   : > { %v872_v46 = vmax.f32 %v870_v43, %v871_v44 }
 0x269   : > { %v920_v2 = vpop.permute.xlu2 %919 }
 0x26a   : > { %v873_v47 = vrot.slane %v872_v46, 4  ;;  %v893_v48 = vpop.permute.xlu1 %892  ;;  %v890_v49 = vpop.permute.xlu0 %889  ;;  %vm942_vm13 = vcmp.eq.s32.totalorder %v920_v2, 1 }
 0x26b   : > { %vm932_vm5 = vcmp.eq.s32.totalorder %v890_v49, 1  ;;  %vm933_vm6 = vcmp.eq.s32.totalorder %v893_v48, 1 }
 0x26c   : > { %v874_v50 = vmax.f32 %v872_v46, %v873_v47  ;;  %v948_v12 = vsel %vm932_vm5, %v1780_v4, -inf  ;;  %v949_v62 = vsel %vm933_vm6, %v1786_v10, -inf }
 0x26e   : > { %v875_v51 = vrot.slane %v874_v50, 2 }
 0x270   : > { %v876_v52 = vmax.f32 %v874_v50, %v875_v51 }
 0x272   : > { %v877_v54 = vrot.slane %v876_v52, 1  ;;  %v899_v55 = vpop.permute.xlu1 %898  ;;  %v905_v56 = vpop.permute.xlu0 %904 }
 0x273   : > { %vm935_vm1 = vcmp.eq.s32.totalorder %v899_v55, 1  ;;  %vm937_vm4 = vcmp.eq.s32.totalorder %v905_v56, 1 }
 0x274   : > { %v878_v60 = vmax.f32 %v876_v52, %v877_v54  ;;  %v951_v5 = vsel %vm935_vm1, %v1798_v22, -inf  ;;  %v953_v11 = vsel %vm937_vm4, %v1810_v34, -inf  ;;  %v929_v22 = vpop.permute.xlu2 %928  ;;  %v964_v34 = vmax.f32 %v948_v12, %v952_v17 }
 0x275   : > { %v963_v14 = vmax.f32 %v947_v3, %v951_v5  ;;  %v965_v59 = vmax.f32 %v949_v62, %v953_v11  ;;  %vm945_vm14 = vcmp.eq.s32.totalorder %v929_v22, 1 }
 0x276   : > { %v880_v61 = vmax.f32 %v879_v58, %v878_v60  ;;  %v961_v7 = vsel %vm945_vm14, %v1816_v40, -inf }
 0x277   : > { %v967_v24 = vmax.f32 %v963_v14, %v955_v18 }
 0x278   : > { %881 = vst [vmem:[#allocation3] sm:$0x1] %v880_v61 }
 0x27a   : > { %v908_v63 = vpop.permute.xlu1 %907  ;;  %v914_v0 = vpop.permute.xlu0 %913 }
 0x27b   : > { %vm938_vm7 = vcmp.eq.s32.totalorder %v908_v63, 1  ;;  %vm940_vm11 = vcmp.eq.s32.totalorder %v914_v0, 1 }
 0x27c   : > { %v954_v15 = vsel %vm938_vm7, %v1777_v1, -inf  ;;  %v956_v4 = vsel %vm940_vm11, %v1789_v13, -inf }
 0x27d   : > { %v966_v23 = vmax.f32 %v962_v20, %v954_v15  ;;  %v968_v1 = vmax.f32 %v964_v34, %v956_v4 }
 0x282   : > { %v917_v6 = vpop.permute.xlu1 %916  ;;  %v923_v8 = vpop.permute.xlu0 %922 }
 0x283   : > { %vm941_vm8 = vcmp.eq.s32.totalorder %v917_v6, 1  ;;  %vm943_vm12 = vcmp.eq.s32.totalorder %v923_v8, 1 }
 0x284   : > { %v957_v16 = vsel %vm941_vm8, %v1795_v19, -inf  ;;  %v959_v21 = vsel %vm943_vm12, %v1807_v31, -inf  ;;  %v958_v19 = vsel %vm942_vm13, %v1801_v25, -inf }
 0x285   : > { %v969_v10 = vmax.f32 %v965_v59, %v957_v16  ;;  %v971_v27 = vmax.f32 %v967_v24, %v959_v21  ;;  %v970_v29 = vmax.f32 %v966_v23, %v958_v19 }
 0x287   : > { %v973_v30 = vmax.f32 %v969_v10, %v961_v7  ;;  %v974_v13 = vmax.f32 %v970_v29, %v971_v27 }
 0x28a   : > { %v926_v26 = vpop.permute.xlu1 %925 }
 0x28b   : > { %vm944_vm15 = vcmp.eq.s32.totalorder %v926_v26, 1 }
 0x28c   : > { %v960_v28 = vsel %vm944_vm15, %v1813_v37, -inf }
 0x28d   : > { %v972_v32 = vmax.f32 %v968_v1, %v960_v28 }
 0x28f   : > { %v975_v33 = vmax.f32 %v972_v32, %v973_v30 }
 0x291   : > { %v976_v31 = vmax.f32 %v974_v13, %v975_v33 }
 0x293   : > { %v977_v35 = vrot.slane %v976_v31, 4 }
 0x295   : > { %v978_v36 = vmax.f32 %v976_v31, %v977_v35 }
 0x297   : > { %v979_v38 = vrot.slane %v978_v36, 2 }
 0x299   : > { %v980_v39 = vmax.f32 %v978_v36, %v979_v38 }
 0x29b   : > { %v981_v41 = vrot.slane %v980_v39, 1 }
 0x29d   : > { %v982_v43 = vmax.f32 %v980_v39, %v981_v41 }
 0x29f   : > { %v984_v44 = vmax.f32 %v983_v42, %v982_v43 }
 0x2a1   : > { %985 = vst [vmem:[#allocation3 + $0x1] sm:$0x1] %v984_v44 }
 0x2a2 PF: > { %987 = sbr.rel (!%p290_p1) target bundleno = 682 (0x2aa), region = 83 }
 0x2a8   : > { %v988_v25 = vld [vmem:[#allocation3] sm:$0xff] }
 0x2a9   : > { %989 = vst [vmem:[#allocation8] sm:$0xff] %v988_v25 }
 0x2aa PF: > { %p1399_p9 = scmp.eq.s32.totalorder %s1114_s24, 2  ;;  %s998_s6 = sshll.u32 %s1977_s5, 4  ;;  %s999_s6 = int_to_ptr.hbm [resolvable:$true] %s998_s6 }
 0x2ab   : > { %s1583_s10 = smov [#allocation8]  }
 0x2ac   : > { %s996_s13 = sshll.u32 %s1583_s10, 4  ;;  %s997_s13 = int_to_ptr.vmem [resolvable:$true] %s996_s13 }
 0x2ad   : > { %1391 = dma.vmem_to_hbm [thread:$0]  (%p1399_p9), %s997_s13, 128, %s999_s6, [#allocation7]  }
 0x2ae   : > { %1551 = dma.done.wait (%p1399_p9), [#allocation7], 128  }
 0x2af   : > { %1553 = vsyncadd (%p1399_p9), [#allocation7], 4294967168 }
 0x2b0 PF: > { %s19_s23 = sadd.s32 1, %s1576_s23   ;;  %s1981_s18 = smov %s1560_s19 }
 0x2b1   : > { %p16_p10 = scmp.ge.s32.totalorder %s19_s23, 5   ;;  %s1982_s19 = smov %s1564_s20 }
 0x2b2   : > { %s1983_s20 = smov %s1665_s30  ;;  %s1984_s21 = smov %s1572_s22 }
 0x2b3   : > { %s1985_s22 = smov %s1987_s25  ;;  %18 = sbr.rel (!%p16_p10) target bundleno = 5 (0x5), region = 132 }
 0x2b8   :  { %1012 = vsyncpa [#allocation6], 1 }
 0x2b9   :  { %1014 = vsyncpa [#allocation6 + $0x1], 1 }
 0x2ba   :  { %1015 = vsyncpa [#allocation7], 1 }
 0x2bb   :  { %1017 = vsyncpa [#allocation7 + $0x1], 1 }
 0x2bc   :  { %1018 = vsyncmov [#allocation4] }
 0x2bf   :  { %s1019_s24 = vpop.sfrf %1018 }
 0x2c0   :  { %p1248_p11 = scmp.ne.s32.totalorder %s1019_s24, 0 }
 0x2c2   :  { %1023 = shalt.err (%p1248_p11)  }

</bundles_post_ra>
